<compile_context>
chip_gen: v7x
topology: tpu7x:2x2x1
jax: 0.10.0
libtpu: 0.0.40
codegen_flags: <defaults>
</compile_context>

<pallas_src>
import jax
import jax.numpy as jnp
from jax.experimental import pallas as pl
from jax.experimental.pallas import tpu as pltpu

_LANE = 128
_SUBLANE = 8


def _round_up(x: int, m: int) -> int:
    return ((x + m - 1) // m) * m


def _pick_row_tile(M: int, tm: int) -> int:
    """Row-tile size: <= tm, multiple of 8, and >= 2 grid steps when M allows
    (so both v7x TensorCores get work under dimension_semantics=('parallel',))."""
    if M <= _SUBLANE:
        return M                      # single tiny block equals full array dim
    return min(tm, max(_SUBLANE, _round_up(pl.cdiv(M, 2), _SUBLANE)))


def _vmem_limit_bytes(tm, d_in, n_outs, x_bytes, w_bytes, o_bytes) -> int:
    """Scoped-VMEM budget: double-buffered activation/output tiles + resident
    weights/biases (counted x2 to be safe), with 2x headroom and a small floor."""
    x_tiles = 2 * len(n_outs) * tm * d_in * x_bytes
    o_tiles = 2 * sum(tm * n for n in n_outs) * o_bytes
    w_res = 2 * sum(d_in * n for n in n_outs) * w_bytes
    b_res = 2 * sum(_SUBLANE * n for n in n_outs) * 4
    need = x_tiles + o_tiles + w_res + b_res
    return int(min(96 * 2**20, max(2 * need, 4 * 2**20)))


# ----------------------------- Pallas kernels ------------------------------ #
def _qkv_proj_kernel(qx_ref, kx_ref, vx_ref,
                     wq_ref, bq_ref, wk_ref, bk_ref, wv_ref, bv_ref,
                     qo_ref, ko_ref, vo_ref):
    """Generic path: three independent activation streams (distinct Q/K/V inputs).

    x refs: (tm, d_model) activation tiles (original dtype, cast to bf16 for the MXU)
    w refs: (d_model, Npad) fused, pre-transposed bf16 weights (heads on the out axis,
            Npad a multiple of 128 -> lane-dense, unmasked output stores)
    b refs: (1, Npad) f32 fused biases
    o refs: (tm, Npad) lane-dense output tiles
    """
    def proj(x_ref, w_ref, b_ref, o_ref):
        acc = jnp.dot(x_ref[...].astype(w_ref.dtype), w_ref[...],
                      preferred_element_type=jnp.float32)
        o_ref[...] = (acc + b_ref[...]).astype(o_ref.dtype)

    proj(qx_ref, wq_ref, bq_ref, qo_ref)
    proj(kx_ref, wk_ref, bk_ref, ko_ref)
    proj(vx_ref, wv_ref, bv_ref, vo_ref)


def _shared_qkv_proj_kernel(x_ref, w_ref, b_ref, o_ref):
    """Self-attention fast path: one activation stream, Q/K/V weights concatenated
    along the fused output axis -> a single, fuller-N MXU matmul per row tile."""
    acc = jnp.dot(x_ref[...].astype(w_ref.dtype), w_ref[...],
                  preferred_element_type=jnp.float32)
    o_ref[...] = (acc + b_ref[...]).astype(o_ref.dtype)


# ------------------------------ pallas_call wrappers ----------------------- #
def fused_qkv_projection(qf, kf, vf, wq, bq, wk, bk, wv, bv, *, tm=512):
    """All-heads Q/K/V projections in one pallas_call (distinct activation streams).

    qf/kf/vf: [M, d_model] activations.
    wq/wk/wv: [d_model, Npad] pre-transposed fused bf16 weights (Npad % 128 == 0).
    bq/bk/bv: [1, Npad] f32 fused biases.
    Returns ([M, Nq_pad], [M, Nk_pad], [M, Nv_pad]) in the activations' dtype.
    """
    M, d_in = qf.shape
    nq, nk, nv = wq.shape[1], wk.shape[1], wv.shape[1]
    tm = _pick_row_tile(M, tm)
    grid = (pl.cdiv(M, tm),)        # partial last block: padded reads, masked writes

    x_spec = pl.BlockSpec((tm, d_in), lambda i: (i, 0))
    # Constant index_map -> weights/biases stay resident across grid steps.
    # (On v7x, pipeline_mode=pl.Buffered(1) here would halve their VMEM residency.)
    def w_spec(n):
        return pl.BlockSpec((d_in, n), lambda i: (0, 0))

    def b_spec(n):
        return pl.BlockSpec((1, n), lambda i: (0, 0))

    def o_spec(n):
        return pl.BlockSpec((tm, n), lambda i: (i, 0))

    out_dtype = qf.dtype
    return pl.pallas_call(
        _qkv_proj_kernel,
        out_shape=(jax.ShapeDtypeStruct((M, nq), out_dtype),
                   jax.ShapeDtypeStruct((M, nk), out_dtype),
                   jax.ShapeDtypeStruct((M, nv), out_dtype)),
        grid=grid,
        in_specs=[x_spec, x_spec, x_spec,
                  w_spec(nq), b_spec(nq),
                  w_spec(nk), b_spec(nk),
                  w_spec(nv), b_spec(nv)],
        out_specs=(o_spec(nq), o_spec(nk), o_spec(nv)),
        compiler_params=pltpu.CompilerParams(
            dimension_semantics=("parallel",),   # disjoint output row tiles
            vmem_limit_bytes=_vmem_limit_bytes(
                tm, d_in, (nq, nk, nv),
                qf.dtype.itemsize, wq.dtype.itemsize, qf.dtype.itemsize)),
    )(qf, kf, vf, wq, bq, wk, bk, wv, bv)


def fused_shared_qkv_projection(xf, w_all, b_all, *, tm=512):
    """Self-attention path: one activation stream, one [d_model, Nq+Nk+Nv] weight."""
    M, d_in = xf.shape
    n = w_all.shape[1]
    tm = _pick_row_tile(M, tm)
    grid = (pl.cdiv(M, tm),)
    out_dtype = xf.dtype
    return pl.pallas_call(
        _shared_qkv_proj_kernel,
        out_shape=jax.ShapeDtypeStruct((M, n), out_dtype),
        grid=grid,
        in_specs=[pl.BlockSpec((tm, d_in), lambda i: (i, 0)),
                  pl.BlockSpec((d_in, n), lambda i: (0, 0)),
                  pl.BlockSpec((1, n), lambda i: (0, 0))],
        out_specs=pl.BlockSpec((tm, n), lambda i: (i, 0)),
        compiler_params=pltpu.CompilerParams(
            dimension_semantics=("parallel",),
            vmem_limit_bytes=_vmem_limit_bytes(
                tm, d_in, (n,),
                xf.dtype.itemsize, w_all.dtype.itemsize, xf.dtype.itemsize)),
    )(xf, w_all, b_all)


# --------------------------- Module-level wrapper -------------------------- #
class MultiHeadAttentionPallas:
    """JAX/Pallas port of reformer MultiHeadAttention (attn_type='DotProductAttention')."""

    def __init__(self, n_attn_heads, d_model, d_q, d_k, d_v, key,
                 row_tile=512, compute_dtype=jnp.bfloat16):
        self.n_heads = n_attn_heads
        self.d_model = d_model
        self.d_q, self.d_k, self.d_v = d_q, d_k, d_v
        self.row_tile = row_tile        # 512 everywhere; 1024 is fine on v6e's 128 MiB VMEM
        ks = jax.random.split(key, 6)
        bound = 1.0 / jnp.sqrt(d_model)  # PyTorch nn.Linear default init range

        def u(k, shape):
            return jax.random.uniform(k, shape, jnp.float32, -bound, bound)

        # Stacked per-head Linear params, PyTorch layout [out_features, in_features].
        self.Wq = u(ks[0], (n_attn_heads, d_q, d_model))
        self.bq = u(ks[1], (n_attn_heads, d_q))
        self.Wk = u(ks[2], (n_attn_heads, d_k, d_model))
        self.bk = u(ks[3], (n_attn_heads, d_k))
        self.Wv = u(ks[4], (n_attn_heads, d_v, d_model))
        self.bv = u(ks[5], (n_attn_heads, d_v))

        # Logical and lane-padded fused output widths (heads concatenated on features).
        self.nq = n_attn_heads * d_q
        self.nk = n_attn_heads * d_k
        self.nv = n_attn_heads * d_v
        self.nq_pad = _round_up(self.nq, _LANE)
        self.nk_pad = _round_up(self.nk, _LANE)
        self.nv_pad = _round_up(self.nv, _LANE)

        # One-time host-side fuse: [H, d_out, d_model] -> [d_model, Npad] bf16, so the
        # kernel does a canonical (M,K)x(K,N) matmul with no in-kernel w.T, lane-dense
        # (unmasked) output stores, and the output is already the head concatenation.
        def fuse_w(w, n_pad):
            H, d_out, d_in = w.shape
            wf = jnp.transpose(w, (2, 0, 1)).reshape(d_in, H * d_out)
            if n_pad > H * d_out:
                wf = jnp.pad(wf, ((0, 0), (0, n_pad - H * d_out)))
            return wf.astype(compute_dtype)

        def fuse_b(b, n_pad):
            H, d_out = b.shape
            bf = b.reshape(1, H * d_out)
            if n_pad > H * d_out:
                bf = jnp.pad(bf, ((0, 0), (0, n_pad - H * d_out)))
            return bf.astype(jnp.float32)   # bias stays f32 (added to the f32 accumulator)

        self.Wq_all = fuse_w(self.Wq, self.nq_pad)
        self.Wk_all = fuse_w(self.Wk, self.nk_pad)
        self.Wv_all = fuse_w(self.Wv, self.nv_pad)
        self.bq_all = fuse_b(self.bq, self.nq_pad)
        self.bk_all = fuse_b(self.bk, self.nk_pad)
        self.bv_all = fuse_b(self.bv, self.nv_pad)

        # Self-attention fast path: Q/K/V weights concatenated on the fused out axis
        # (each piece stays 128-aligned so per-projection slices are lane-aligned).
        self.Wqkv_all = jnp.concatenate([self.Wq_all, self.Wk_all, self.Wv_all], axis=1)
        self.bqkv_all = jnp.concatenate([self.bq_all, self.bk_all, self.bv_all], axis=1)

        # NOTE: d_model (the K axis) is left unpadded; padding it would require an
        # extra HBM pass over the activations.  For tiny dims (e.g. 32) the kernel is
        # overhead/DMA bound and MXU geometry tuning is irrelevant.

    def __call__(self, Q, K, V):
        # Q/K/V: [batch, seq, d_model]
        B, S, D = Q.shape
        M = B * S
        H = self.n_heads

        if Q is K and K is V:
            # Self-attention: 1x activation stream + one concatenated-N matmul.
            out = fused_shared_qkv_projection(
                Q.reshape(M, D), self.Wqkv_all, self.bqkv_all, tm=self.row_tile)
            q_slab = out[:, :self.nq]
            k_slab = out[:, self.nq_pad:self.nq_pad + self.nk]
            v_slab = out[:, self.nq_pad + self.nk_pad:
                         self.nq_pad + self.nk_pad + self.nv]
        else:
            qo, ko, vo = fused_qkv_projection(
                Q.reshape(M, D), K.reshape(M, D), V.reshape(M, D),
                self.Wq_all, self.bq_all,
                self.Wk_all, self.bk_all,
                self.Wv_all, self.bv_all, tm=self.row_tile)
            q_slab = qo[:, :self.nq]
            k_slab = ko[:, :self.nk]
            v_slab = vo[:, :self.nv]

        # Lane-dense, head-concatenated slabs; per-head views are pure reshapes
        # (no [M,H,d] -> [H,M,d] transpose / extra HBM round trip in the hot path).
        head_outputs = q_slab.reshape(B, S, self.nq)
        QW = q_slab.reshape(B, S, H, self.d_q)
        KW = k_slab.reshape(B, S, H, self.d_k)
        VW = v_slab.reshape(B, S, H, self.d_v)

        # TODO(synk): reference DotProductAttention.forward stops after the projections
        # (no scores/softmax/return) and MultiHeadAttention.forward concatenates Module
        # objects with no return; we expose the per-head Q projections concatenated
        # along the feature axis as head_outputs.
        return head_outputs, (QW, KW, VW)


# ---------------------------------- Main ----------------------------------- #
if __name__ == "__main__":
    n_heads, d_model, d_q, d_k, d_v = 2, 32, 16, 16, 16
    batch, seq = 2, 8

    root = jax.random.PRNGKey(0)
    k_param, k_q, k_k, k_v = jax.random.split(root, 4)

    mha = MultiHeadAttentionPallas(n_heads, d_model, d_q, d_k, d_v, k_param)

    Q = jax.random.normal(k_q, (batch, seq, d_model), jnp.float32)
    K = jax.random.normal(k_k, (batch, seq, d_model), jnp.float32)
    V = jax.random.normal(k_v, (batch, seq, d_model), jnp.float32)

    # Generic path (distinct Q/K/V activation streams).
    head_outputs, (QW, KW, VW) = mha(Q, K, V)
    for a in (head_outputs, QW, KW, VW):
        jax.block_until_ready(a)

    # Reference: PyTorch Linear convention per head, emulating the bf16 MXU inputs
    # with f32 accumulation and an f32 bias add.
    def ref_proj(x, W, b):
        xb = x.astype(jnp.bfloat16).astype(jnp.float32)
        Wb = W.astype(jnp.bfloat16).astype(jnp.float32)
        return jnp.einsum("bsd,hod->bsho", xb, Wb) + b[None, None, :, :]

    assert jnp.allclose(QW, ref_proj(Q, mha.Wq, mha.bq), atol=1e-4, rtol=1e-4)
    assert jnp.allclose(KW, ref_proj(K, mha.Wk, mha.bk), atol=1e-4, rtol=1e-4)
    assert jnp.allclose(VW, ref_proj(V, mha.Wv, mha.bv), atol=1e-4, rtol=1e-4)
    assert head_outputs.shape == (batch, seq, n_heads * d_q)
    assert jnp.allclose(head_outputs, QW.reshape(batch, seq, n_heads * d_q))

    # Self-attention fast path (Q is K is V): single activation stream kernel.
    ho2, (QW2, KW2, VW2) = mha(Q, Q, Q)
    for a in (ho2, QW2, KW2, VW2):
        jax.block_until_ready(a)
    assert jnp.allclose(QW2, ref_proj(Q, mha.Wq, mha.bq), atol=1e-4, rtol=1e-4)
    assert jnp.allclose(KW2, ref_proj(Q, mha.Wk, mha.bk), atol=1e-4, rtol=1e-4)
    assert jnp.allclose(VW2, ref_proj(Q, mha.Wv, mha.bv), atol=1e-4, rtol=1e-4)
    assert jnp.allclose(ho2, QW2.reshape(batch, seq, n_heads * d_q))

    print("KERNEL_OK")
</pallas_src>

<mosaic_0001>
module attributes {stable_mosaic.version = 11 : i64} {
  func.func @_qkv_proj_kernel(%arg0: i32, %arg1: memref<8x32xf32, #tpu.memory_space<vmem>>, %arg2: memref<8x32xf32, #tpu.memory_space<vmem>>, %arg3: memref<8x32xf32, #tpu.memory_space<vmem>>, %arg4: memref<32x128xbf16, #tpu.memory_space<vmem>>, %arg5: memref<1x128xf32, #tpu.memory_space<vmem>>, %arg6: memref<32x128xbf16, #tpu.memory_space<vmem>>, %arg7: memref<1x128xf32, #tpu.memory_space<vmem>>, %arg8: memref<32x128xbf16, #tpu.memory_space<vmem>>, %arg9: memref<1x128xf32, #tpu.memory_space<vmem>>, %arg10: memref<8x128xf32, #tpu.memory_space<vmem>>, %arg11: memref<8x128xf32, #tpu.memory_space<vmem>>, %arg12: memref<8x128xf32, #tpu.memory_space<vmem>>) attributes {dimension_semantics = [#tpu.dimension_semantics<parallel>], iteration_bounds = array<i64: 2>, scalar_prefetch = 0 : i64, scratch_operands = 0 : i64, tpu.core_type = #tpu.core_type<tc>, window_params = [{transform_indices = @transform_0, window_bounds = array<i64: 8, 32>}, {transform_indices = @transform_1, window_bounds = array<i64: 8, 32>}, {transform_indices = @transform_2, window_bounds = array<i64: 8, 32>}, {pipeline_mode = #tpu.pipeline_mode<synchronous>, transform_indices = @transform_3, window_bounds = array<i64: 32, 128>}, {pipeline_mode = #tpu.pipeline_mode<synchronous>, transform_indices = @transform_4, window_bounds = array<i64: 1, 128>}, {pipeline_mode = #tpu.pipeline_mode<synchronous>, transform_indices = @transform_5, window_bounds = array<i64: 32, 128>}, {pipeline_mode = #tpu.pipeline_mode<synchronous>, transform_indices = @transform_6, window_bounds = array<i64: 1, 128>}, {pipeline_mode = #tpu.pipeline_mode<synchronous>, transform_indices = @transform_7, window_bounds = array<i64: 32, 128>}, {pipeline_mode = #tpu.pipeline_mode<synchronous>, transform_indices = @transform_8, window_bounds = array<i64: 1, 128>}, {transform_indices = @transform_9, window_bounds = array<i64: 8, 128>}, {transform_indices = @transform_10, window_bounds = array<i64: 8, 128>}, {transform_indices = @transform_11, window_bounds = array<i64: 8, 128>}]} {
    %c0 = arith.constant 0 : index
    %c0_0 = arith.constant 0 : index
    %0 = vector.load %arg1[%c0, %c0_0] : memref<8x32xf32, #tpu.memory_space<vmem>>, vector<8x32xf32>
    %1 = arith.truncf %0 : vector<8x32xf32> to vector<8x32xbf16>
    %c0_1 = arith.constant 0 : index
    %c0_2 = arith.constant 0 : index
    %2 = vector.load %arg4[%c0_1, %c0_2] : memref<32x128xbf16, #tpu.memory_space<vmem>>, vector<32x128xbf16>
    %cst = arith.constant dense<0.000000e+00> : vector<8x128xf32>
    %3 = tpu.matmul %1, %2, %cst {dimension_numbers = #tpu.dot_dimension_numbers<[1], [0], [0], [1], [0, 0, 1, 1], [], []>} : vector<8x32xbf16>, vector<32x128xbf16>, vector<8x128xf32> -> vector<8x128xf32>
    %c0_3 = arith.constant 0 : index
    %c0_4 = arith.constant 0 : index
    %4 = vector.load %arg5[%c0_3, %c0_4] : memref<1x128xf32, #tpu.memory_space<vmem>>, vector<1x128xf32>
    %5 = vector.broadcast %4 : vector<1x128xf32> to vector<8x128xf32>
    %6 = arith.addf %3, %5 : vector<8x128xf32>
    %c0_5 = arith.constant 0 : index
    %c0_6 = arith.constant 0 : index
    %7 = vector.load %arg10[%c0_5, %c0_6] : memref<8x128xf32, #tpu.memory_space<vmem>>, vector<8x128xf32>
    tpu.vector_store %arg10[%c0_5, %c0_6], %6 {strides = array<i32>} : memref<8x128xf32, #tpu.memory_space<vmem>>, vector<8x128xf32>,
    %c0_7 = arith.constant 0 : index
    %c0_8 = arith.constant 0 : index
    %8 = vector.load %arg2[%c0_7, %c0_8] : memref<8x32xf32, #tpu.memory_space<vmem>>, vector<8x32xf32>
    %9 = arith.truncf %8 : vector<8x32xf32> to vector<8x32xbf16>
    %c0_9 = arith.constant 0 : index
    %c0_10 = arith.constant 0 : index
    %10 = vector.load %arg6[%c0_9, %c0_10] : memref<32x128xbf16, #tpu.memory_space<vmem>>, vector<32x128xbf16>
    %cst_11 = arith.constant dense<0.000000e+00> : vector<8x128xf32>
    %11 = tpu.matmul %9, %10, %cst_11 {dimension_numbers = #tpu.dot_dimension_numbers<[1], [0], [0], [1], [0, 0, 1, 1], [], []>} : vector<8x32xbf16>, vector<32x128xbf16>, vector<8x128xf32> -> vector<8x128xf32>
    %c0_12 = arith.constant 0 : index
    %c0_13 = arith.constant 0 : index
    %12 = vector.load %arg7[%c0_12, %c0_13] : memref<1x128xf32, #tpu.memory_space<vmem>>, vector<1x128xf32>
    %13 = vector.broadcast %12 : vector<1x128xf32> to vector<8x128xf32>
    %14 = arith.addf %11, %13 : vector<8x128xf32>
    %c0_14 = arith.constant 0 : index
    %c0_15 = arith.constant 0 : index
    %15 = vector.load %arg11[%c0_14, %c0_15] : memref<8x128xf32, #tpu.memory_space<vmem>>, vector<8x128xf32>
    tpu.vector_store %arg11[%c0_14, %c0_15], %14 {strides = array<i32>} : memref<8x128xf32, #tpu.memory_space<vmem>>, vector<8x128xf32>,
    %c0_16 = arith.constant 0 : index
    %c0_17 = arith.constant 0 : index
    %16 = vector.load %arg3[%c0_16, %c0_17] : memref<8x32xf32, #tpu.memory_space<vmem>>, vector<8x32xf32>
    %17 = arith.truncf %16 : vector<8x32xf32> to vector<8x32xbf16>
    %c0_18 = arith.constant 0 : index
    %c0_19 = arith.constant 0 : index
    %18 = vector.load %arg8[%c0_18, %c0_19] : memref<32x128xbf16, #tpu.memory_space<vmem>>, vector<32x128xbf16>
    %cst_20 = arith.constant dense<0.000000e+00> : vector<8x128xf32>
    %19 = tpu.matmul %17, %18, %cst_20 {dimension_numbers = #tpu.dot_dimension_numbers<[1], [0], [0], [1], [0, 0, 1, 1], [], []>} : vector<8x32xbf16>, vector<32x128xbf16>, vector<8x128xf32> -> vector<8x128xf32>
    %c0_21 = arith.constant 0 : index
    %c0_22 = arith.constant 0 : index
    %20 = vector.load %arg9[%c0_21, %c0_22] : memref<1x128xf32, #tpu.memory_space<vmem>>, vector<1x128xf32>
    %21 = vector.broadcast %20 : vector<1x128xf32> to vector<8x128xf32>
    %22 = arith.addf %19, %21 : vector<8x128xf32>
    %c0_23 = arith.constant 0 : index
    %c0_24 = arith.constant 0 : index
    %23 = vector.load %arg12[%c0_23, %c0_24] : memref<8x128xf32, #tpu.memory_space<vmem>>, vector<8x128xf32>
    tpu.vector_store %arg12[%c0_23, %c0_24], %22 {strides = array<i32>} : memref<8x128xf32, #tpu.memory_space<vmem>>, vector<8x128xf32>,
    return
  }
  func.func @transform_0(%arg0: i32) -> (i32, i32) {
    %c0_i32 = arith.constant 0 : i32
    %c0_i32_0 = arith.constant 0 : i32
    return %arg0, %c0_i32 : i32, i32
  }
  func.func @transform_1(%arg0: i32) -> (i32, i32) {
    %c0_i32 = arith.constant 0 : i32
    %c0_i32_0 = arith.constant 0 : i32
    return %arg0, %c0_i32 : i32, i32
  }
  func.func @transform_2(%arg0: i32) -> (i32, i32) {
    %c0_i32 = arith.constant 0 : i32
    %c0_i32_0 = arith.constant 0 : i32
    return %arg0, %c0_i32 : i32, i32
  }
  func.func @transform_3(%arg0: i32) -> (i32, i32) {
    %c0_i32 = arith.constant 0 : i32
    %c0_i32_0 = arith.constant 0 : i32
    %c0_i32_1 = arith.constant 0 : i32
    return %c0_i32, %c0_i32_0 : i32, i32
  }
  func.func @transform_4(%arg0: i32) -> (i32, i32) {
    %c0_i32 = arith.constant 0 : i32
    %c0_i32_0 = arith.constant 0 : i32
    %c0_i32_1 = arith.constant 0 : i32
    return %c0_i32, %c0_i32_0 : i32, i32
  }
  func.func @transform_5(%arg0: i32) -> (i32, i32) {
    %c0_i32 = arith.constant 0 : i32
    %c0_i32_0 = arith.constant 0 : i32
    %c0_i32_1 = arith.constant 0 : i32
    return %c0_i32, %c0_i32_0 : i32, i32
  }
  func.func @transform_6(%arg0: i32) -> (i32, i32) {
    %c0_i32 = arith.constant 0 : i32
    %c0_i32_0 = arith.constant 0 : i32
    %c0_i32_1 = arith.constant 0 : i32
    return %c0_i32, %c0_i32_0 : i32, i32
  }
  func.func @transform_7(%arg0: i32) -> (i32, i32) {
    %c0_i32 = arith.constant 0 : i32
    %c0_i32_0 = arith.constant 0 : i32
    %c0_i32_1 = arith.constant 0 : i32
    return %c0_i32, %c0_i32_0 : i32, i32
  }
  func.func @transform_8(%arg0: i32) -> (i32, i32) {
    %c0_i32 = arith.constant 0 : i32
    %c0_i32_0 = arith.constant 0 : i32
    %c0_i32_1 = arith.constant 0 : i32
    return %c0_i32, %c0_i32_0 : i32, i32
  }
  func.func @transform_9(%arg0: i32) -> (i32, i32) {
    %c0_i32 = arith.constant 0 : i32
    %c0_i32_0 = arith.constant 0 : i32
    return %arg0, %c0_i32 : i32, i32
  }
  func.func @transform_10(%arg0: i32) -> (i32, i32) {
    %c0_i32 = arith.constant 0 : i32
    %c0_i32_0 = arith.constant 0 : i32
    return %arg0, %c0_i32 : i32, i32
  }
  func.func @transform_11(%arg0: i32) -> (i32, i32) {
    %c0_i32 = arith.constant 0 : i32
    %c0_i32_0 = arith.constant 0 : i32
    return %arg0, %c0_i32 : i32, i32
  }
}

</mosaic_0001>

<bundles_post_ra>
// kernel: tpu_custom_call.1
= control target key start
LH: loop header
LB: loop body
LE: loop exit
PB: predicated region body
PF: predicated region fallthrough
CT: control target
= control target key end

     0   :  { %s1904_s0 = inlined_call_operand.hbm [shape: f32[16,32], index: 0, kind: input, shape index: {}]   ;;  %s1905_s1 = inlined_call_operand.hbm [shape: f32[16,32], index: 1, kind: input, shape index: {}]   ;;  %s1906_s2 = inlined_call_operand.hbm [shape: f32[16,32], index: 2, kind: input, shape index: {}]   ;;  %s1907_s3 = inlined_call_operand.hbm [shape: bf16[32,128], index: 3, kind: input, shape index: {}]   ;;  %s1908_s4 = inlined_call_operand.vmem [shape: f32[1,128], index: 4, kind: input, shape index: {}]   ;;  %s1909_s5 = inlined_call_operand.vmem [shape: bf16[32,128], index: 5, kind: input, shape index: {}]   ;;  %s1910_s6 = inlined_call_operand.vmem [shape: f32[1,128], index: 6, kind: input, shape index: {}]   ;;  %s1911_s7 = inlined_call_operand.hbm [shape: bf16[32,128], index: 7, kind: input, shape index: {}]   ;;  %s1912_s8 = inlined_call_operand.vmem [shape: f32[1,128], index: 8, kind: input, shape index: {}]   ;;  %s1913_s9 = inlined_call_operand.hbm [shape: f32[16,128], index: 9, kind: output, shape index: {0}]   ;;  %s1914_s10 = inlined_call_operand.hbm [shape: f32[16,128], index: 10, kind: output, shape index: {1}]   ;;  %s1915_s11 = inlined_call_operand.hbm [shape: f32[16,128], index: 11, kind: output, shape index: {2}]  }
   0x1   :  { %1938 = sst [smem:[#allocation25_spill]] %s1905_s1 }
   0x2   :  { %1939 = sst [smem:[#allocation26_spill]] %s1907_s3 }
   0x3   :  { %1940 = sst [smem:[#allocation27_spill]] %s1912_s8 }
   0x4   :  { %1941 = sst [smem:[#allocation28_spill]] %s1915_s11 }
   0x5   :  { %17 = vsyncpa [#allocation3], 0 }
   0x6   :  { %19 = vsyncpa [#allocation3 + $0x1], 0 }
   0x7   :  { %20 = vsyncpa [#allocation6], 0 }
   0x8   :  { %22 = vsyncpa [#allocation6 + $0x1], 0 }
   0x9   :  { %23 = vsyncpa [#allocation9], 0 }
   0xa   :  { %24 = vsyncpa [#allocation4], 0 }
   0xb   :  { %26 = vsyncpa [#allocation4 + $0x1], 0 }
   0xc   :  { %27 = vsyncpa [#allocation13], 0 }
   0xd   :  { %29 = vsyncpa [#allocation13 + $0x1], 0  ;;  %s1496_s17 = smov 0   ;;  %s1498_s18 = smov 0  }
   0xe   :  { %s1500_s19 = smov 0   ;;  %s1502_s20 = smov 0  }
   0xf LB: > { %1942 = sst [smem:[#allocation20_spill]] %s1410_s17  ;;  %s1517_s21 = sadd.s32 4294967295, %s1422_s20   ;;  %s1422_s20 = sphi %s1502_s20, %s1979_s20   ;;  %s1418_s19 = sphi %s1500_s19, %s1983_s19   ;;  %s1414_s18 = sphi %s1498_s18, %s1982_s18   ;;  %s1410_s17 = sphi %s1496_s17, %s1981_s17  }
  0x10   : > { %1943 = sst [smem:[#allocation21_spill]] %s1422_s20  ;;  %s1916_s22 = sadd.s32 4294967294, %s1422_s20  }
  0x11   : > { %p55_p0 = scmp.ne.s32.totalorder %s1414_s18, %s1410_s17  ;;  %p1918_p1 = scmp.eq.s32.totalorder %s1517_s21, 0 }
  0x12   : > { %p263_p3 = scmp.eq.s32.totalorder %s1916_s22, 1  ;;  %p973_p5 = scmp.ge.s32.totalorder %s1422_s20, 1 }
  0x13   : > { %p1528_p4 = por %p1918_p1, %p55_p0  ;;  %p322_p7 = scmp.lt.s32.totalorder %s1422_s20, 3 }
  0x14   : > { %p1533_p6 = por %p263_p3, %p55_p0  ;;  %s1424_s26 = smov [#allocation8]  }
  0x15   : > { %s1944_s23 = scalar_select %p1528_p4, 1, 0 }
  0x16   : > { %s1945_s24 = scalar_select %p1533_p6, 1, 0 }
  0x17   : > { %p1538_p8 = pnand %p973_p5, %p322_p7  ;;  %s334_s27 = sshll.u32 %s1424_s26, 4  ;;  %s1542_s27 = int_to_ptr.vmem [resolvable:$true] %s334_s27 }
  0x18   : > { %1946 = sst [smem:[#allocation22_spill]] %s1945_s24  ;;  %s1554_s29 = sadd.s32 1, %s1422_s20  }
  0x19   : > { %s1947_s25 = scalar_select %p1538_p8, 1, 0 }
  0x1a   : > { %p1065_p9 = pneg %p1538_p8  ;;  %1949 = sst [smem:[#allocation23_spill]] %s1554_s29 }
  0x1b   : > { %s42_s30 = sadd.s32 1, %s1418_s19  ;;  %s39_s12 = ssub.s32 %s1422_s20, %s1554_s29 }
  0x1c   : > { %p1549_p11 = pnand %p1065_p9, %p1918_p1  ;;  %s1950_s3 = sld [smem:[#allocation26_spill]] }
  0x1e   : > { %s1948_s28 = scalar_select %p1549_p11, 1, 0 }
  0x1f   : > { %p1928_p13 = pneg %p1549_p11 }
  0x22   : > { %s1142_s15 = scalar_lea.hbm %s1950_s3, 256 }
  0x23   : > { %p1143_p12 = scmp.ne.s32.totalorder %s1950_s3, %s1142_s15  ;;  %p1149_p5 = scmp.lt.u32.totalorder %s1142_s15, %s1950_s3 }
  0x25   : > { %p1145_p0 = pnand %p1928_p13, %p1143_p12 }
  0x27   : > { %p1146_p3 = pneg %p1145_p0 }
  0x29   : > { %p1151_p7 = pnand %p1149_p5, %p1146_p3 }
  0x2b   : > { %1154 = shalt.err (!%p1151_p7)
}
  0x2c   : > { %s1155_s13 = scalar_lea.vmem %s1542_s27, 256  ;;  %p1163_p2 = scmp.lt.s32.totalorder %s1542_s27, %s1542_s27 }
  0x2d   : > { %p1156_p9 = scmp.ne.s32.totalorder %s1542_s27, %s1155_s13  ;;  %p1164_p12 = scmp.lt.s32.totalorder %s1155_s13, %s1155_s13 }
  0x2f   : > { %p1158_p10 = pnand %p1156_p9, %p1928_p13  ;;  %p1165_p0 = por %p1164_p12, %p1163_p2 }
  0x31   : > { %p1159_p1 = pneg %p1158_p10 }
  0x33   : > { %p1166_p6 = pnand %p1165_p0, %p1159_p1 }
  0x35   : > { %1169 = shalt.err (!%p1166_p6)
}
  0x36   : > { %s1922_s22 = smov 64   ;;  %s1923_s24 = smov 4  }
  0x37   : > { %1068 = dma.hbm_to_vmem [thread:$0]  (!%p1549_p11), %s1950_s3, 256, %s1542_s27, [#allocation9], %s1922_s22, %s1922_s22, %s1923_s24  }
  0x38   : > { %p40_p1 = scmp.eq.s32.totalorder %s39_s12, 0  ;;  %p49_p2 = scmp.ne.s32.totalorder %s1418_s19, %s1414_s18 }
  0x39   : > { %p50_p6 = scmp.eq.s32.totalorder %s1422_s20, 0  ;;  %p1094_p10 = scmp.lt.s32.totalorder %s1422_s20, 2 }
  0x3a   : > { %s1594_s16 = scalar_select %p40_p1, %s1418_s19, %s42_s30  }
  0x3b   : > { %p51_p3 = por %p50_p6, %p49_p2  ;;  %p1952_p5 = scmp.eq.s32.totalorder %s1517_s21, 1 }
  0x3c   : > { %1951 = sst [smem:[#allocation24_spill]] %s1594_s16  ;;  %s1924_s13 = sand.u32 1, %s1418_s19  }
  0x3d   : > { %p1598_p7 = por %p1952_p5, %p49_p2  ;;  %s1604_s29 = sshll.u32 %s1422_s20, 7 }
  0x3e   : > { %s1608_s17 = sshll.u32 %s1924_s13, 3  ;;  %p1610_p9 = pnand %p1094_p10, %p51_p3 }
  0x3f   : > { %s1953_s26 = scalar_select %p1598_p7, 1, 0 }
  0x40   : > { %s1954_s27 = scalar_select %p1610_p9, 1, 0 }
  0x41   : > { %s391_s30 = sand.u32 1, %s1422_s20   ;;  %s1955_s1 = sld [smem:[#allocation25_spill]] }
  0x42   : > { %s395_s22 = scalar_lea.vmem [#allocation5], %s1608_s17  ;;  %s1624_s13 = scalar_lea.sflag [#allocation6], %s391_s30 }
  0x43   : > { %s402_s24 = sshll.u32 %s395_s22, 4  ;;  %p1630_p0 = pneg %p1610_p9  ;;  %s1622_s24 = int_to_ptr.vmem [resolvable:$true] %s402_s24 }
  0x45   : > { %s1956_s16 = scalar_select %p1630_p0, 1, 0 }
  0x47   : > { %s1619_s15 = scalar_lea.hbm %s1955_s1, %s1604_s29  ;;  %s1175_s20 = scalar_lea.hbm %s1955_s1, 256 }
  0x48   : > { %s1170_s3 = scalar_lea.hbm %s1619_s15, 128  ;;  %p1176_p6 = scmp.lt.u32.totalorder %s1619_s15, %s1955_s1 }
  0x49   : > { %p1171_p12 = scmp.ne.s32.totalorder %s1619_s15, %s1170_s3  ;;  %p1177_p10 = scmp.lt.u32.totalorder %s1175_s20, %s1170_s3 }
  0x4a   : > { %p1179_p5 = scmp.lt.u32.totalorder %s1170_s3, %s1619_s15 }
  0x4b   : > { %p1173_p1 = pnand %p1630_p0, %p1171_p12  ;;  %p1178_p3 = por %p1177_p10, %p1176_p6 }
  0x4d   : > { %p1174_p2 = pneg %p1173_p1  ;;  %p1180_p13 = por %p1179_p5, %p1178_p3 }
  0x4f   : > { %p1181_p7 = pnand %p1180_p13, %p1174_p2 }
  0x51   : > { %1184 = shalt.err (!%p1181_p7)
}
  0x52   : > { %s1185_s30 = scalar_lea.vmem %s1622_s24, 128  ;;  %s1427_s12 = smov [#allocation5]  }
  0x53   : > { %p1186_p12 = scmp.ne.s32.totalorder %s1622_s24, %s1185_s30  ;;  %s1190_s14 = sshll.u32 %s1427_s12, 4  ;;  %s1191_s14 = int_to_ptr.vmem [resolvable:$false] %s1190_s14 }
  0x54   : > { %s1192_s11 = scalar_lea.vmem %s1191_s14, 256  ;;  %p1193_p8 = scmp.lt.s32.totalorder %s1622_s24, %s1191_s14 }
  0x55   : > { %p1188_p1 = pnand %p1186_p12, %p1630_p0  ;;  %p1194_p11 = scmp.lt.s32.totalorder %s1192_s11, %s1185_s30 }
  0x57   : > { %p1189_p4 = pneg %p1188_p1  ;;  %p1195_p6 = por %p1194_p11, %p1193_p8 }
  0x59   : > { %p1196_p10 = pnand %p1195_p6, %p1189_p4 }
  0x5b   : > { %1199 = shalt.err (!%p1196_p10)
}
  0x5c   : > { %1078 = dma.hbm_to_vmem [thread:$0]  (!%p1610_p9), %s1619_s15, 128, %s1622_s24, %s1624_s13  }
  0x5d   : > { %s1428_s3 = smov [#allocation10]   ;;  %s1200_s12 = scalar_lea.hbm %s1911_s7, 256 }
  0x5e   : > { %s356_s20 = sshll.u32 %s1428_s3, 4  ;;  %p1201_p8 = scmp.ne.s32.totalorder %s1911_s7, %s1200_s12  ;;  %s357_s20 = int_to_ptr.vmem [resolvable:$true] %s356_s20 }
  0x5f   : > { %p1957_p4 = scmp.ne.s32.totalorder %s1948_s28, 0  ;;  %p1207_p2 = scmp.lt.u32.totalorder %s1200_s12, %s1911_s7 }
  0x61   : > { %p1958_p11 = pneg %p1957_p4 }
  0x63   : > { %p1203_p13 = pnand %p1201_p8, %p1958_p11 }
  0x65   : > { %p1204_p7 = pneg %p1203_p13 }
  0x67   : > { %p1209_p3 = pnand %p1207_p2, %p1204_p7 }
  0x69   : > { %1212 = shalt.err (!%p1209_p3)
}
  0x6a   : > { %s1213_s24 = scalar_lea.vmem %s357_s20, 256  ;;  %p1959_p12 = pmov %p1958_p11 }
  0x6b   : > { %p1214_p5 = scmp.ne.s32.totalorder %s357_s20, %s1213_s24  ;;  %p1221_p10 = scmp.lt.s32.totalorder %s357_s20, %s357_s20 }
  0x6c   : > { %p1222_p9 = scmp.lt.s32.totalorder %s1213_s24, %s1213_s24 }
  0x6d   : > { %p1216_p1 = pnand %p1214_p5, %p1959_p12 }
  0x6e   : > { %p1223_p0 = por %p1222_p9, %p1221_p10 }
  0x6f   : > { %p1217_p6 = pneg %p1216_p1 }
  0x71   : > { %p1224_p8 = pnand %p1223_p0, %p1217_p6 }
  0x73   : > { %1227 = shalt.err (!%p1224_p8)
}
  0x74   : > { %s1960_s1 = smov 4   ;;  %s1961_s8 = smov 64  }
  0x75   : > { %1071 = dma.hbm_to_vmem [thread:$0]  (!%p1957_p4), %s1911_s7, 256, %s357_s20, [#allocation9], %s1961_s8, %s1961_s8, %s1960_s1  }
  0x76   : > { %s1681_s14 = scalar_lea.hbm %s1904_s0, %s1604_s29  ;;  %s377_s28 = scalar_lea.vmem [#allocation2], %s1608_s17 }
  0x77   : > { %s384_s30 = sshll.u32 %s377_s28, 4  ;;  %s1962_s11 = sand.u32 1, %s1418_s19   ;;  %s385_s30 = int_to_ptr.vmem [resolvable:$true] %s384_s30 }
  0x78   : > { %s374_s24 = scalar_lea.sflag [#allocation3], %s1962_s11  ;;  %s1228_s15 = scalar_lea.hbm %s1681_s14, 128 }
  0x79   : > { %p1229_p9 = scmp.ne.s32.totalorder %s1681_s14, %s1228_s15  ;;  %p1963_p0 = scmp.ne.s32.totalorder %s1956_s16, 0 }
  0x7a   : > { %s1233_s8 = scalar_lea.hbm %s1904_s0, 256  ;;  %p1234_p4 = scmp.lt.u32.totalorder %s1681_s14, %s1904_s0 }
  0x7b   : > { %p1231_p11 = pnand %p1229_p9, %p1963_p0  ;;  %p1235_p7 = scmp.lt.u32.totalorder %s1233_s8, %s1228_s15 }
  0x7c   : > { %p1237_p3 = scmp.lt.u32.totalorder %s1228_s15, %s1681_s14 }
  0x7d   : > { %p1232_p13 = pneg %p1231_p11  ;;  %p1236_p2 = por %p1235_p7, %p1234_p4 }
  0x7f   : > { %p1238_p5 = por %p1237_p3, %p1236_p2 }
  0x81   : > { %p1239_p12 = pnand %p1238_p5, %p1232_p13 }
  0x83   : > { %1242 = shalt.err (!%p1239_p12)
}
  0x84   : > { %s1243_s12 = scalar_lea.vmem %s385_s30, 128  ;;  %s1429_s28 = smov [#allocation2]  }
  0x85   : > { %p1244_p1 = scmp.ne.s32.totalorder %s385_s30, %s1243_s12  ;;  %s1248_s11 = sshll.u32 %s1429_s28, 4  ;;  %s1249_s11 = int_to_ptr.vmem [resolvable:$false] %s1248_s11 }
  0x86   : > { %s1250_s20 = scalar_lea.vmem %s1249_s11, 256  ;;  %p1251_p8 = scmp.lt.s32.totalorder %s385_s30, %s1249_s11 }
  0x87   : > { %p1246_p6 = pnand %p1244_p1, %p1963_p0  ;;  %p1252_p9 = scmp.lt.s32.totalorder %s1250_s20, %s1243_s12 }
  0x89   : > { %p1247_p10 = pneg %p1246_p6  ;;  %p1253_p11 = por %p1252_p9, %p1251_p8 }
  0x8b   : > { %p1254_p4 = pnand %p1253_p11, %p1247_p10 }
  0x8d   : > { %1257 = shalt.err (!%p1254_p4)
}
  0x8e   : > { %p1964_p7 = scmp.ne.s32.totalorder %s1954_s27, 0  ;;  %s1707_s8 = scalar_lea.hbm %s1906_s2, %s1604_s29 }
  0x8f   : > { %s413_s3 = scalar_lea.vmem [#allocation7], %s1608_s17  ;;  %s1258_s12 = scalar_lea.hbm %s1707_s8, 128 }
  0x90   : > { %1075 = dma.hbm_to_vmem [thread:$0]  (!%p1964_p7), %s1681_s14, 128, %s385_s30, %s374_s24  }
  0x91   : > { %s420_s22 = sshll.u32 %s413_s3, 4  ;;  %p1259_p13 = scmp.ne.s32.totalorder %s1707_s8, %s1258_s12  ;;  %s421_s22 = int_to_ptr.vmem [resolvable:$true] %s420_s22 }
  0x92   : > { %s1263_s14 = scalar_lea.hbm %s1906_s2, 256  ;;  %p1264_p5 = scmp.lt.u32.totalorder %s1707_s8, %s1906_s2 }
  0x93   : > { %p1261_p2 = pnand %p1259_p13, %p1963_p0  ;;  %p1265_p12 = scmp.lt.u32.totalorder %s1263_s14, %s1258_s12 }
  0x94   : > { %p1267_p6 = scmp.lt.u32.totalorder %s1258_s12, %s1707_s8 }
  0x95   : > { %p1262_p3 = pneg %p1261_p2  ;;  %p1266_p1 = por %p1265_p12, %p1264_p5 }
  0x97   : > { %p1268_p10 = por %p1267_p6, %p1266_p1 }
  0x99   : > { %p1269_p8 = pnand %p1268_p10, %p1262_p3 }
  0x9b   : > { %1272 = shalt.err (!%p1269_p8)
}
  0x9c   : > { %s1273_s17 = scalar_lea.vmem %s421_s22, 128  ;;  %s1430_s29 = smov [#allocation7]  }
  0x9d   : > { %p1274_p9 = scmp.ne.s32.totalorder %s421_s22, %s1273_s17  ;;  %s1278_s20 = sshll.u32 %s1430_s29, 4  ;;  %s1279_s20 = int_to_ptr.vmem [resolvable:$false] %s1278_s20 }
  0x9e   : > { %s1280_s15 = scalar_lea.vmem %s1279_s20, 256  ;;  %p1281_p13 = scmp.lt.s32.totalorder %s421_s22, %s1279_s20 }
  0x9f   : > { %p1276_p11 = pnand %p1274_p9, %p1963_p0  ;;  %p1282_p2 = scmp.lt.s32.totalorder %s1280_s15, %s1273_s17 }
  0xa1   : > { %p1277_p4 = pneg %p1276_p11  ;;  %p1283_p7 = por %p1282_p2, %p1281_p13 }
  0xa3   : > { %p1284_p5 = pnand %p1283_p7, %p1277_p4 }
  0xa5   : > { %1287 = shalt.err (!%p1284_p5)
}
  0xa6   : > { %p1965_p12 = scmp.ne.s32.totalorder %s1954_s27, 0  ;;  %p1966_p3 = scmp.ne.s32.totalorder %s1947_s25, 0 }
  0xa7   : > { %s1731_s16 = sand.u32 (!%p1966_p3), 1, %s1414_s18   ;;  %p1967_p0 = scmp.ne.s32.totalorder (!%p1966_p3), %s1944_s23, 0 }
  0xa8   : > { %1081 = dma.hbm_to_vmem [thread:$0]  (!%p1965_p12), %s1707_s8, 128, %s421_s22, %s1624_s13  }
  0xa9   : > { %429 = sbr.rel (%p1966_p3) target bundleno = 475 (0x1db), region = 56  ;;  %s1734_s1 = sshll.u32 (!%p1966_p3), %s1731_s16, 3 }
  0xaa   : > { %s432_s3 = scalar_lea.sflag (!%p1966_p3), [#allocation3], %s1731_s16  ;;  %s435_s12 = scalar_lea.vmem (!%p1966_p3), [#allocation2], %s1734_s1 }
  0xb0   : > { %1389 = dma.done.wait (%p1967_p0), %s432_s3, 128  }
  0xb1   : > { %1391 = vsyncadd (%p1967_p0), %s432_s3, 4294967168  ;;  %s440_s25 = sand.u32 1, %s1517_s21   ;;  %s444_s27 = scalar_lea.vmem [#allocation5], %s1734_s1 }
  0xb2   : > { %s441_s13 = scalar_lea.sflag [#allocation6], %s440_s25 }
  0xb3   : > { %1393 = dma.done.wait (%p1967_p0), %s441_s13, 256  }
  0xb4   : > { %1395 = vsyncadd (%p1967_p0), %s441_s13, 4294967040  ;;  %s453_s8 = scalar_lea.vmem [#allocation7], %s1734_s1  ;;  %p1968_p7 = scmp.eq.s32.totalorder %s1517_s21, 0 }
  0xb6   : > { %1397 = dma.done.wait (%p1968_p7), [#allocation9], 512   ;;  %p1969_p1 = pmov %p1968_p7 }
  0xb7   : > { %v1431_v0 = vmov 0.0   ;;  %vm1432_vm0 = vmmov 0   ;;  %v1136_v1 = vld [vmem:[#allocation8] sm:$0xff]   ;;  %v1137_v2 = vld [vmem:[#allocation8 + $0x8] sm:$0xff]   ;;  %v1138_v3 = vld [vmem:[%s1909_s5] sm:$0xff]   ;;  %vm546_vm1 = vcmask 261120  }
  0xb8   : > { %1399 = vsyncadd (%p1969_p1), [#allocation9], 4294966784  ;;  %1021 = vmatprep.subr.bf16.mxu0 %v1431_v0  ;;  %1029 = vmatprep.subr.bf16.mxu1 %v1431_v0  ;;  %v521_v4 = vld [vmem:[%s435_s12] sm:$0xff]  ;;  %v591_v7 = vld [vmem:[%s444_s27] sm:$0xff]  ;;  %s1768_s24 = sshll.u32 %s1517_s21, 7  ;;  %s505_s17 = scalar_lea.vmem [#allocation11], %s1734_s1 }
  0xb9   : > { %1025 = vmatprep.mubr.msk.bf16.mxu0 %vm1432_vm0, %v1431_v0  ;;  %1033 = vmatprep.mubr.msk.bf16.mxu1 %vm1432_vm0, %v1431_v0  ;;  %v522_v5 = vpack.c.bf16 %v521_v4, %v521_v4  ;;  %v1140_v6 = vld [vmem:[%s1909_s5 + $0x8] sm:$0xff]   ;;  %v1139_v8 = vld [vmem:[#allocation10] sm:$0xff]   ;;  %v592_v9 = vpack.c.bf16 %v591_v7, %v591_v7  ;;  %s753_s29 = sshll.u32 %s505_s17, 4  ;;  %s512_s3 = scalar_lea.vmem [#allocation12], %s1734_s1  ;;  %s1783_s29 = int_to_ptr.vmem [resolvable:$true] %s753_s29 }
  0xba   : > { %1022 = vmatpush3.bf16.msra.mxu0 %v1136_v1  ;;  %1030 = vmatpush3.bf16.msra.mxu1 %v1138_v3  ;;  %v1141_v10 = vld [vmem:[#allocation10 + $0x8] sm:$0xff]   ;;  %v992_v13 = vld [vmem:[%s1908_s4] ss:$0 sm:$0xff]  ;;  %s766_s12 = sshll.u32 %s512_s3, 4  ;;  %s1789_s28 = scalar_lea.hbm %s1914_s10, %s1768_s24  ;;  %s1791_s12 = int_to_ptr.vmem [resolvable:$true] %s766_s12 }
  0xbb   : > { %1023 = vmatprep.subr.bf16.mxu0 %v1431_v0  ;;  %1031 = vmatprep.subr.bf16.mxu1 %v1431_v0  ;;  %v660_v11 = vld [vmem:[%s453_s8] sm:$0xff]  ;;  %s1781_s8 = scalar_lea.hbm %s1913_s9, %s1768_s24  ;;  %s730_s11 = scalar_lea.sflag [#allocation4], %s1731_s16 }
  0xbc   : > { %v661_v12 = vpack.c.bf16 %v660_v11, %v660_v11  ;;  %v996_v15 = vld [vmem:[%s1910_s6] ss:$0 sm:$0xff]  ;;  %s1288_s14 = scalar_lea.vmem %s1783_s29, 128  ;;  %p1970_p10 = scmp.ne.s32.totalorder %s1953_s26, 0 }
  0xbd   : > { %p1289_p6 = scmp.ne.s32.totalorder %s1783_s29, %s1288_s14  ;;  %s1433_s30 = smov [#allocation11]  }
  0xbe   : > { %1024 = vmatpush3.bf16.msra.mxu0 %v1137_v2  ;;  %1032 = vmatpush3.bf16.msra.mxu1 %v1140_v6 }
  0xbf   : > { %1037 = vmatprep.subr.bf16.mxu0 %v1431_v0  ;;  %p1290_p8 = pnand %p1289_p6, %p1970_p10 }
  0xc1   : > { %1026 = vmatmul.mubr.msk.bf16.vlgmr.msra.gmra.mrb[0].mxu0 %vm546_vm1, %v522_v5  ;;  %1034 = vmatmul.mubr.msk.bf16.vlgmr.msra.gmra.mrb[0].mxu1 %vm546_vm1, %v592_v9  ;;  %p1291_p9 = pneg %p1290_p8 }
  0xc2   : > { %1038 = vmatpush3.bf16.msra.mxu0 %v1139_v8  ;;  %1041 = vmatprep.mubr.msk.bf16.mxu0 %vm1432_vm0, %v1431_v0 }
  0xc3   : > { %1039 = vmatprep.subr.bf16.mxu0 %v1431_v0 }
  0xc6   : > { %1040 = vmatpush3.bf16.msra.mxu0 %v1141_v10 }
  0xc9   : > { %1042 = vmatmul.mubr.msk.bf16.vlgmr.msra.gmra.mrb[4].mxu0 %vm546_vm1, %v661_v12 }
 0x194   : > { %v584_v14 = vpop.f32.mrb[0].mxu0  ;;  %v653_v19 = vpop.f32.mrb[0].mxu1 }
 0x195   : > { %v585_v16 = vadd.f32 %v992_v13, %v584_v14  ;;  %v1027_v17 = vpop.f32.mrb[1].mxu0  ;;  %v654_v21 = vadd.f32 %v996_v15, %v653_v19  ;;  %v1035_v22 = vpop.f32.mrb[1].mxu1 }
 0x196   : > { %v587_v18 = vpop.f32.mrb[2].mxu0  ;;  %v656_v23 = vpop.f32.mrb[2].mxu1 }
 0x197   : > { %590 = vst [vmem:[%s505_s17] sm:$0xff] %v585_v16  ;;  %v1028_v20 = vpop.f32.mrb[3].mxu0  ;;  %s1292_s17 = sshll.u32 %s1433_s30, 4  ;;  %s1293_s17 = int_to_ptr.vmem [resolvable:$false] %s1292_s17 }
 0x198   : > { %s1294_s20 = scalar_lea.vmem %s1293_s17, 256  ;;  %p1295_p11 = scmp.lt.s32.totalorder %s1783_s29, %s1293_s17 }
 0x199   : > { %p1296_p4 = scmp.lt.s32.totalorder %s1294_s20, %s1288_s14 }
 0x19b   : > { %p1297_p13 = por %p1296_p4, %p1295_p11 }
 0x19d   : > { %p1298_p2 = pnand %p1297_p13, %p1291_p9 }
 0x19f   : > { %1301 = shalt.err (!%p1298_p2)
}
 0x1a0   : > { %s1302_s16 = scalar_lea.hbm %s1781_s8, 128  ;;  %s1306_s27 = scalar_lea.hbm %s1913_s9, 256 }
 0x1a1   : > { %p1303_p5 = scmp.ne.s32.totalorder %s1781_s8, %s1302_s16  ;;  %p1307_p0 = scmp.lt.u32.totalorder %s1781_s8, %s1913_s9 }
 0x1a2   : > { %p1308_p7 = scmp.lt.u32.totalorder %s1306_s27, %s1302_s16  ;;  %p1310_p6 = scmp.lt.u32.totalorder %s1302_s16, %s1781_s8 }
 0x1a3   : > { %p1304_p12 = pnand %p1303_p5, %p1970_p10 }
 0x1a4   : > { %p1309_p1 = por %p1308_p7, %p1307_p0 }
 0x1a5   : > { %p1305_p3 = pneg %p1304_p12 }
 0x1a6   : > { %p1311_p8 = por %p1310_p6, %p1309_p1 }
 0x1a8   : > { %p1312_p9 = pnand %p1311_p8, %p1305_p3 }
 0x1aa   : > { %1315 = shalt.err (!%p1312_p9)
}
 0x1ab   : > { %1059 = dma.vmem_to_hbm [thread:$0]  (%p1970_p10), %s1783_s29, 128, %s1781_s8, %s730_s11   ;;  %659 = vst [vmem:[%s512_s3] sm:$0xff] %v654_v21  ;;  %v1036_v24 = vpop.f32.mrb[3].mxu1 }
 0x1ac   : > { %s519_s14 = scalar_lea.vmem [#allocation14], %s1734_s1  ;;  %s1971_s16 = sld [smem:[#allocation27_spill]] }
 0x1ad   : > { %s1820_s30 = sshll.u32 %s519_s14, 4  ;;  %s1827_s15 = scalar_lea.sflag [#allocation13], %s440_s25  ;;  %s1858_s30 = int_to_ptr.vmem [resolvable:$true] %s1820_s30 }
 0x1ae   : > { %s1316_s13 = scalar_lea.vmem %s1791_s12, 128  ;;  %s1434_s29 = smov [#allocation12]  }
 0x1af   : > { %p1317_p11 = scmp.ne.s32.totalorder %s1791_s12, %s1316_s13  ;;  %s1320_s8 = sshll.u32 %s1434_s29, 4  ;;  %s1321_s8 = int_to_ptr.vmem [resolvable:$false] %s1320_s8 }
 0x1b0   : > { %s1322_s3 = scalar_lea.vmem %s1321_s8, 256  ;;  %p1323_p2 = scmp.lt.s32.totalorder %s1791_s12, %s1321_s8 }
 0x1b1   : > { %p1318_p4 = pnand %p1317_p11, %p1970_p10  ;;  %p1324_p5 = scmp.lt.s32.totalorder %s1322_s3, %s1316_s13 }
 0x1b2   : > { %v1000_v25 = vld [vmem:[%s1971_s16] ss:$0 sm:$0xff] }
 0x1b3   : > { %p1319_p13 = pneg %p1318_p4  ;;  %p1325_p12 = por %p1324_p5, %p1323_p2 }
 0x1b5   : > { %p1326_p3 = pnand %p1325_p12, %p1319_p13 }
 0x1b7   : > { %1329 = shalt.err (!%p1326_p3)
}
 0x1b8   : > { %s1330_s21 = scalar_lea.hbm %s1789_s28, 128  ;;  %s1334_s27 = scalar_lea.hbm %s1914_s10, 256 }
 0x1b9   : > { %p1331_p0 = scmp.ne.s32.totalorder %s1789_s28, %s1330_s21  ;;  %p1335_p6 = scmp.lt.u32.totalorder %s1789_s28, %s1914_s10 }
 0x1ba   : > { %p1336_p8 = scmp.lt.u32.totalorder %s1334_s27, %s1330_s21  ;;  %p1338_p11 = scmp.lt.u32.totalorder %s1330_s21, %s1789_s28 }
 0x1bb   : > { %p1332_p7 = pnand %p1331_p0, %p1970_p10 }
 0x1bc   : > { %p1337_p9 = por %p1336_p8, %p1335_p6 }
 0x1bd   : > { %p1333_p1 = pneg %p1332_p7 }
 0x1be   : > { %p1339_p4 = por %p1338_p11, %p1337_p9 }
 0x1c0   : > { %p1340_p13 = pnand %p1339_p4, %p1333_p1 }
 0x1c2   : > { %1343 = shalt.err (!%p1340_p13)
}
 0x1c3   : > { %1060 = dma.vmem_to_hbm [thread:$0]  (%p1970_p10), %s1791_s12, 128, %s1789_s28, %s1827_s15   ;;  %v722_v26 = vpop.f32.mrb[4].mxu0 }
 0x1c4   : > { %v723_v27 = vadd.f32 %v1000_v25, %v722_v26  ;;  %v1043_v28 = vpop.f32.mrb[5].mxu0  ;;  %s1972_s16 = sld [smem:[#allocation28_spill]]  ;;  %s1344_s29 = scalar_lea.vmem %s1858_s30, 128 }
 0x1c5   : > { %v725_v29 = vpop.f32.mrb[6].mxu0  ;;  %p1345_p2 = scmp.ne.s32.totalorder %s1858_s30, %s1344_s29  ;;  %s1435_s12 = smov [#allocation14]  }
 0x1c6   : > { %728 = vst [vmem:[%s519_s14] sm:$0xff] %v723_v27  ;;  %v1044_v30 = vpop.f32.mrb[7].mxu0  ;;  %s1348_s28 = sshll.u32 %s1435_s12, 4  ;;  %s1349_s28 = int_to_ptr.vmem [resolvable:$false] %s1348_s28 }
 0x1c7   : > { %p1346_p5 = pnand %p1345_p2, %p1970_p10  ;;  %s1350_s8 = scalar_lea.vmem %s1349_s28, 256 }
 0x1c8   : > { %p1351_p3 = scmp.lt.s32.totalorder %s1858_s30, %s1349_s28  ;;  %p1352_p0 = scmp.lt.s32.totalorder %s1350_s8, %s1344_s29 }
 0x1c9   : > { %p1347_p12 = pneg %p1346_p5 }
 0x1ca   : > { %s1855_s13 = scalar_lea.hbm %s1972_s16, %s1768_s24  ;;  %p1353_p7 = por %p1352_p0, %p1351_p3 }
 0x1cc   : > { %p1354_p1 = pnand %p1353_p7, %p1347_p12 }
 0x1ce   : > { %1357 = shalt.err (!%p1354_p1)
}
 0x1cf   : > { %s1358_s1 = scalar_lea.hbm %s1855_s13, 128  ;;  %s1362_s3 = scalar_lea.hbm %s1972_s16, 256 }
 0x1d0   : > { %p1359_p6 = scmp.ne.s32.totalorder %s1855_s13, %s1358_s1  ;;  %p1363_p11 = scmp.lt.u32.totalorder %s1855_s13, %s1972_s16 }
 0x1d1   : > { %p1364_p4 = scmp.lt.u32.totalorder %s1362_s3, %s1358_s1  ;;  %p1366_p2 = scmp.lt.u32.totalorder %s1358_s1, %s1855_s13 }
 0x1d2   : > { %p1360_p8 = pnand %p1359_p6, %p1970_p10 }
 0x1d3   : > { %p1365_p13 = por %p1364_p4, %p1363_p11 }
 0x1d4   : > { %p1361_p9 = pneg %p1360_p8 }
 0x1d5   : > { %p1367_p5 = por %p1366_p2, %p1365_p13 }
 0x1d7   : > { %p1368_p12 = pnand %p1367_p5, %p1361_p9 }
 0x1d9   : > { %1371 = shalt.err (!%p1368_p12)
}
 0x1da   : > { %1061 = dma.vmem_to_hbm [thread:$0]  (%p1970_p10), %s1858_s30, 128, %s1855_s13, %s1827_s15  }
 0x1db PF: > { %s1973_s11 = sld [smem:[#allocation20_spill]]  ;;  %s1974_s27 = sld [smem:[#allocation22_spill]] }
 0x1dc   : > { %s1975_s23 = sld [smem:[#allocation21_spill]] }
 0x1e1   : > { %s791_s22 = sand.u32 1, %s1973_s11   ;;  %p1976_p3 = scmp.ne.s32.totalorder %s1974_s27, 0 }
 0x1e2   : > { %p1977_p0 = scmp.ge.s32.totalorder %s1975_s23, 2  ;;  %s792_s17 = scalar_lea.sflag [#allocation4], %s791_s22 }
 0x1e4   : > { %p1083_p7 = pnand %p1977_p0, %p1976_p3 }
 0x1e6   : > { %1401 = dma.done.wait (!%p1083_p7), %s792_s17, 128  }
 0x1e7   : > { %1403 = vsyncadd (!%p1083_p7), %s792_s17, 4294967168  ;;  %s1978_s20 = sadd.s32 4294967294, %s1975_s23  }
 0x1e8   : > { %s800_s29 = sand.u32 1, %s1978_s20  }
 0x1e9   : > { %s801_s12 = scalar_lea.sflag [#allocation13], %s800_s29 }
 0x1ea   : > { %1405 = dma.done.wait (!%p1083_p7), %s801_s12, 256  }
 0x1eb   : > { %1407 = vsyncadd (!%p1083_p7), %s801_s12, 4294967040  ;;  %s1979_s20 = sld [smem:[#allocation23_spill]]  ;;  %s1980_s26 = sld [smem:[#allocation24_spill]] }
 0x1ec   : > { %s1981_s17 = smov %s1414_s18  ;;  %s1982_s18 = smov %s1418_s19 }
 0x1f1   : > { %p32_p10 = scmp.ge.s32.totalorder %s1979_s20, 4   ;;  %s1983_s19 = smov %s1980_s26 }
 0x1f3   :  { %34 = sbr.rel (!%p32_p10) target bundleno = 15 (0xf), region = 165 }
 0x1fa   :  { %815 = vsyncpa [#allocation3], 1 }
 0x1fb   :  { %817 = vsyncpa [#allocation3 + $0x1], 1 }
 0x1fc   :  { %818 = vsyncpa [#allocation6], 1 }
 0x1fd   :  { %820 = vsyncpa [#allocation6 + $0x1], 1 }
 0x1fe   :  { %821 = vsyncpa [#allocation9], 1 }
 0x1ff   :  { %822 = vsyncpa [#allocation4], 1 }
 0x200   :  { %824 = vsyncpa [#allocation4 + $0x1], 1 }
 0x201   :  { %825 = vsyncpa [#allocation13], 1 }
 0x202   :  { %827 = vsyncpa [#allocation13 + $0x1], 1 }

</bundles_post_ra>
